<compile_context>
chip_gen: v7x
topology: tpu7x:2x2x1
jax: 0.10.0
libtpu: 0.0.40
codegen_flags: <defaults>
</compile_context>

<pallas_src>
import math

import jax
import jax.numpy as jnp
from jax.experimental import pallas as pl
from jax.experimental.pallas import tpu as pltpu


def _fast_recip(x):
    """EUP reciprocal estimate + one Newton step: ~1 ulp, avoids the VALU divide path."""
    r = pl.reciprocal(x, approx=True)
    return r * (2.0 - x * r)


def _sre_kernel(num_classes: int, batch_size: int, batch_tile: int, class_axis: int):
    """Kernel body. class_axis == 0 -> (C, BT) transposed layout; == 1 -> (BT, C) natural."""
    inv_cm1 = 1.0 / (num_classes - 1)
    log_cm1 = math.log(num_classes - 1)
    batch_axis = 1 - class_axis

    def kernel(yhat_ref, y_ref, out_ref):
        logits = yhat_ref[...].astype(jnp.float32)

        # Softmax over the class axis; denominator via EUP reciprocal, not a divide.
        m = jnp.max(logits, axis=class_axis, keepdims=True)
        e = jnp.exp(logits - m)
        p = e * _fast_recip(jnp.sum(e, axis=class_axis, keepdims=True))

        # norm = p/(C-1) + p + 1e-7 ; prob = p/norm ; prob_child = prob/(C-1) exactly.
        inv_norm = _fast_recip(p * (1.0 + inv_cm1) + 1e-07)
        prob = p * inv_norm

        # Single-log rewrite of
        #   prob*log(prob+1e-10) + prob_child*log(prob_child+1e-10)
        # = prob*((1 + 1/(C-1))*log(prob+1e-10) - log(C-1)/(C-1))   (+ O(1e-10) abs).
        lg = jnp.log(prob + 1e-10)
        out = prob * ((1.0 + inv_cm1) * lg - inv_cm1 * log_cm1)

        # Zero-hot mask: select 0 at the true class (no one-hot materialization).
        cls = jax.lax.broadcasted_iota(jnp.int32, out.shape, class_axis)
        out = jnp.where(cls == y_ref[...], 0.0, out)

        # Reduce over classes only -> per-sample partials; zero batch-padding entries.
        per_sample = jnp.sum(out, axis=class_axis, keepdims=True)
        bidx = (pl.program_id(0) * batch_tile
                + jax.lax.broadcasted_iota(jnp.int32, per_sample.shape, batch_axis))
        out_ref[...] = jnp.where(bidx < batch_size, per_sample, 0.0)

    return kernel


def _round_up(x: int, m: int) -> int:
    return -(-x // m) * m


def _vmem_budget():
    """(scoped VMEM limit, kernel working-set budget) adapted to the chip generation."""
    phys = 128 * 1024 * 1024
    try:
        phys = int(getattr(pltpu.get_tpu_info(), "vmem_capacity_bytes", phys) or phys)
    except Exception:
        pass
    # v5e/v6e: 128 MiB physical -> 64 MiB scoped limit; v7x: 64 MiB -> 32 MiB limit.
    limit = max(32 * 1024 * 1024, min(64 * 1024 * 1024, phys // 2))
    return limit, (limit * 3) // 4  # leave ~25% headroom under the scoped limit


def _batch_tiling(num_classes: int, batch: int, wire_bytes: int, budget: int,
                  transposed: bool):
    """Pick the batch-tile extent / padded batch / tile count for the chosen layout."""
    n_temps = 6  # conservative count of full-tile f32 temporaries inside the kernel
    if transposed:                       # (C, BT): batch on lanes
        gran, cap, min_even = 128, 32768, 2048
        c_wire = _round_up(num_classes, 32 // wire_bytes)   # sublane-packed wire slab
        c_f32 = _round_up(num_classes, 8)
    else:                                # (BT, C): batch on sublanes, classes on lanes
        gran, cap, min_even = 32 // wire_bytes, 8192, 512
        c_wire = c_f32 = _round_up(num_classes, 128)
    per_batch = 2 * c_wire * wire_bytes + n_temps * c_f32 * 4 + 2 * (4 + 4)
    if per_batch * gran > budget:
        # TODO(synk): tile the class axis (online-softmax running max/denominator in
        # VMEM scratch) for vocab-sized num_classes instead of failing here.
        raise ValueError(f"num_classes={num_classes} too large for a single class block")

    bt = max(gran, min(cap, (budget // per_batch) // gran * gran))
    b_ceil = _round_up(batch, gran)
    bt = min(bt, b_ceil)
    num_tiles = -(-b_ceil // bt)
    # Prefer an even tile count (v7x has two TensorCores) whenever tiles stay large.
    if num_tiles % 2 == 1 and bt >= 2 * min_even:
        num_tiles += 1
    bt = _round_up(-(-b_ceil // num_tiles), gran)   # balance tiles, minimize padding
    num_tiles = -(-b_ceil // bt)
    return bt, num_tiles * bt, num_tiles


def self_regularized_entropy(yhat: jax.Array, y: jax.Array, num_classes: int) -> jax.Array:
    """Pallas implementation of SelfRegularizedEntropy.forward.

    yhat: (B, C) float logits, y: (B,) int labels. Returns scalar f32 loss.
    """
    B, C = yhat.shape
    assert C == num_classes
    assert num_classes > 1, "num_classes must be > 1 (division by num_classes - 1)"

    wire_bytes = yhat.dtype.itemsize
    limit, budget = _vmem_budget()

    # Small C: put classes on sublanes / batch on lanes so vregs & per-element compute
    # stay lane-dense (one fused pad+transpose relayout pass over the logits).
    # Large C: feed (B, C) as-is -- no extra HBM relayout pass at all.
    transposed = C < 64
    bt, b_pad, num_tiles = _batch_tiling(C, B, wire_bytes, budget, transposed)

    y32 = y.astype(jnp.int32)
    if transposed:
        # TODO(synk): have the logits producer emit (C, B) directly (transpose its final
        # projection) to remove this relayout -- it is the only extra HBM pass left.
        yhat_in = jnp.pad(yhat, ((0, b_pad - B), (0, 0))).T            # (C, b_pad)
        y_in = jnp.pad(y32, (0, b_pad - B)).reshape(1, b_pad)
        in_specs = [pl.BlockSpec((C, bt), lambda i: (0, i)),
                    pl.BlockSpec((1, bt), lambda i: (0, i))]
        out_spec = pl.BlockSpec((1, bt), lambda i: (0, i))
        out_shape = jax.ShapeDtypeStruct((1, b_pad), jnp.float32)
        class_axis = 0
    else:
        yhat_in = yhat if b_pad == B else jnp.pad(yhat, ((0, b_pad - B), (0, 0)))
        y_in = (y32 if b_pad == B else jnp.pad(y32, (0, b_pad - B))).reshape(b_pad, 1)
        in_specs = [pl.BlockSpec((bt, C), lambda i: (i, 0)),
                    pl.BlockSpec((bt, 1), lambda i: (i, 0))]
        out_spec = pl.BlockSpec((bt, 1), lambda i: (i, 0))
        out_shape = jax.ShapeDtypeStruct((b_pad, 1), jnp.float32)
        class_axis = 1

    partials = pl.pallas_call(
        _sre_kernel(num_classes, B, bt, class_axis),
        out_shape=out_shape,
        grid=(num_tiles,),
        in_specs=in_specs,
        out_specs=out_spec,
        compiler_params=pltpu.CompilerParams(
            dimension_semantics=("parallel",),
            vmem_limit_bytes=limit,
        ),
    )(yhat_in, y_in)

    # Tiny final reduction + normalization by batch size outside the kernel.
    return jnp.sum(partials) / jnp.float32(B)


def _reference(yhat, y, num_classes):
    """Pure-JAX reference mirroring the PyTorch forward exactly."""
    B = yhat.shape[0]
    p = jax.nn.softmax(yhat.astype(jnp.float32), axis=1)
    child = p * (1.0 / (num_classes - 1))
    norm = child + p + 1e-07
    prob = p / norm
    prob_c = child / norm
    out = prob * jnp.log(prob + 1e-10) + prob_c * jnp.log(prob_c + 1e-10)
    zerohot = 1.0 - jax.nn.one_hot(y, num_classes, dtype=jnp.float32)
    return jnp.sum(out * zerohot) / B


if __name__ == "__main__":
    key = jax.random.PRNGKey(0)
    k1, k2, k3, k4 = jax.random.split(key, 4)

    # Small-C case (lane-dense transposed layout).
    B1, C1 = 8, 16
    yhat1 = jax.random.normal(k1, (B1, C1), dtype=jnp.float32)
    y1 = jax.random.randint(k2, (B1,), 0, C1, dtype=jnp.int32)
    loss1 = jax.block_until_ready(self_regularized_entropy(yhat1, y1, C1))
    ref1 = jax.block_until_ready(_reference(yhat1, y1, C1))
    assert jnp.allclose(loss1, ref1, rtol=1e-4, atol=1e-5), (loss1, ref1)

    # Wide-C case (natural (B, C) layout: no wrapper transpose pass).
    B2, C2 = 24, 128
    yhat2 = jax.random.normal(k3, (B2, C2), dtype=jnp.float32)
    y2 = jax.random.randint(k4, (B2,), 0, C2, dtype=jnp.int32)
    loss2 = jax.block_until_ready(self_regularized_entropy(yhat2, y2, C2))
    ref2 = jax.block_until_ready(_reference(yhat2, y2, C2))
    assert jnp.allclose(loss2, ref2, rtol=1e-4, atol=1e-5), (loss2, ref2)

    print("KERNEL_OK")
</pallas_src>

<mosaic_0001>
module attributes {stable_mosaic.version = 11 : i64} {
  func.func @kernel(%arg0: i32, %arg1: memref<16x128xf32, #tpu.memory_space<vmem>>, %arg2: memref<1x128xi32, #tpu.memory_space<vmem>>, %arg3: memref<1x128xf32, #tpu.memory_space<vmem>>) attributes {dimension_semantics = [#tpu.dimension_semantics<parallel>], iteration_bounds = array<i64: 1>, scalar_prefetch = 0 : i64, scratch_operands = 0 : i64, tpu.core_type = #tpu.core_type<tc>, window_params = [{transform_indices = @transform_0, window_bounds = array<i64: 16, 128>}, {transform_indices = @transform_1, window_bounds = array<i64: 1, 128>}, {transform_indices = @transform_2, window_bounds = array<i64: 1, 128>}]} {
    %c0 = arith.constant 0 : index
    %c0_0 = arith.constant 0 : index
    %0 = vector.load %arg1[%c0, %c0_0] : memref<16x128xf32, #tpu.memory_space<vmem>>, vector<16x128xf32>
    %cst = arith.constant dense<0xFF800000> : vector<128xf32>
    %1 = vector.multi_reduction <maximumf>, %0, %cst [0] : vector<16x128xf32> to vector<128xf32>
    %2 = vector.shape_cast %1 : vector<128xf32> to vector<1x128xf32>
    %3 = vector.broadcast %2 : vector<1x128xf32> to vector<16x128xf32>
    %4 = arith.subf %0, %3 : vector<16x128xf32>
    %5 = math.exp %4 : vector<16x128xf32>
    %cst_1 = arith.constant dense<0.000000e+00> : vector<128xf32>
    %6 = vector.multi_reduction <add>, %5, %cst_1 [0] : vector<16x128xf32> to vector<128xf32>
    %7 = vector.shape_cast %6 : vector<128xf32> to vector<1x128xf32>
    %8 = tpu.reciprocal %7 {approx = true} : vector<1x128xf32> -> vector<1x128xf32>
    %9 = arith.mulf %7, %8 : vector<1x128xf32>
    %cst_2 = arith.constant 2.000000e+00 : f32
    %10 = vector.broadcast %cst_2 : f32 to vector<1x128xf32>
    %11 = arith.subf %10, %9 : vector<1x128xf32>
    %12 = arith.mulf %8, %11 : vector<1x128xf32>
    %13 = vector.broadcast %12 : vector<1x128xf32> to vector<16x128xf32>
    %14 = arith.mulf %5, %13 : vector<16x128xf32>
    %cst_3 = arith.constant 1.06666672 : f32
    %15 = vector.broadcast %cst_3 : f32 to vector<16x128xf32>
    %16 = arith.mulf %14, %15 : vector<16x128xf32>
    %cst_4 = arith.constant 1.000000e-07 : f32
    %17 = vector.broadcast %cst_4 : f32 to vector<16x128xf32>
    %18 = arith.addf %16, %17 : vector<16x128xf32>
    %19 = tpu.reciprocal %18 {approx = true} : vector<16x128xf32> -> vector<16x128xf32>
    %20 = arith.mulf %18, %19 : vector<16x128xf32>
    %cst_5 = arith.constant 2.000000e+00 : f32
    %21 = vector.broadcast %cst_5 : f32 to vector<16x128xf32>
    %22 = arith.subf %21, %20 : vector<16x128xf32>
    %23 = arith.mulf %19, %22 : vector<16x128xf32>
    %24 = arith.mulf %14, %23 : vector<16x128xf32>
    %cst_6 = arith.constant 1.000000e-10 : f32
    %25 = vector.broadcast %cst_6 : f32 to vector<16x128xf32>
    %26 = arith.addf %24, %25 : vector<16x128xf32>
    %27 = math.log %26 : vector<16x128xf32>
    %cst_7 = arith.constant 1.06666672 : f32
    %28 = vector.broadcast %cst_7 : f32 to vector<16x128xf32>
    %29 = arith.mulf %28, %27 : vector<16x128xf32>
    %cst_8 = arith.constant 0.180536687 : f32
    %30 = vector.broadcast %cst_8 : f32 to vector<16x128xf32>
    %31 = arith.subf %29, %30 : vector<16x128xf32>
    %32 = arith.mulf %24, %31 : vector<16x128xf32>
    %33 = tpu.iota {dimensions = array<i32: 0>} : vector<16x128xi32>
    %c0_9 = arith.constant 0 : index
    %c0_10 = arith.constant 0 : index
    %34 = vector.load %arg2[%c0_9, %c0_10] : memref<1x128xi32, #tpu.memory_space<vmem>>, vector<1x128xi32>
    %35 = vector.broadcast %34 : vector<1x128xi32> to vector<16x128xi32>
    %36 = arith.cmpi eq, %33, %35 : vector<16x128xi32>
    %cst_11 = arith.constant 0.000000e+00 : f32
    %37 = vector.broadcast %cst_11 : f32 to vector<16x128xf32>
    %38 = arith.select %36, %37, %32 : vector<16x128xi1>, vector<16x128xf32>
    %cst_12 = arith.constant dense<0.000000e+00> : vector<128xf32>
    %39 = vector.multi_reduction <add>, %38, %cst_12 [0] : vector<16x128xf32> to vector<128xf32>
    %40 = vector.shape_cast %39 : vector<128xf32> to vector<1x128xf32>
    %c128_i32 = arith.constant 128 : i32
    %41 = arith.muli %arg0, %c128_i32 : i32
    %42 = tpu.iota {dimensions = array<i32: 1>} : vector<1x128xi32>
    %43 = vector.broadcast %41 : i32 to vector<1x128xi32>
    %44 = arith.addi %43, %42 : vector<1x128xi32>
    %c8_i32 = arith.constant 8 : i32
    %45 = vector.broadcast %c8_i32 : i32 to vector<1x128xi32>
    %46 = arith.cmpi slt, %44, %45 : vector<1x128xi32>
    %cst_13 = arith.constant 0.000000e+00 : f32
    %47 = vector.broadcast %cst_13 : f32 to vector<1x128xf32>
    %48 = arith.select %46, %40, %47 : vector<1x128xi1>, vector<1x128xf32>
    %c0_14 = arith.constant 0 : index
    %c0_15 = arith.constant 0 : index
    %49 = vector.load %arg3[%c0_14, %c0_15] : memref<1x128xf32, #tpu.memory_space<vmem>>, vector<1x128xf32>
    tpu.vector_store %arg3[%c0_14, %c0_15], %48 {strides = array<i32>} : memref<1x128xf32, #tpu.memory_space<vmem>>, vector<1x128xf32>,
    return
  }
  func.func @transform_0(%arg0: i32) -> (i32, i32) {
    %c0_i32 = arith.constant 0 : i32
    %c0_i32_0 = arith.constant 0 : i32
    return %c0_i32, %arg0 : i32, i32
  }
  func.func @transform_1(%arg0: i32) -> (i32, i32) {
    %c0_i32 = arith.constant 0 : i32
    %c0_i32_0 = arith.constant 0 : i32
    return %c0_i32, %arg0 : i32, i32
  }
  func.func @transform_2(%arg0: i32) -> (i32, i32) {
    %c0_i32 = arith.constant 0 : i32
    %c0_i32_0 = arith.constant 0 : i32
    return %c0_i32, %arg0 : i32, i32
  }
}

</mosaic_0001>

<bundles_post_ra>
// kernel: tpu_custom_call.1
= control target key start
LH: loop header
LB: loop body
LE: loop exit
PB: predicated region body
PF: predicated region fallthrough
CT: control target
= control target key end

     0   :  { %7 = vsyncpa [#allocation3], 0  ;;  %s285_s0 = inlined_call_operand.hbm [shape: f32[16,128], index: 0, kind: input, shape index: {}]   ;;  %s286_s1 = inlined_call_operand.hbm [shape: s32[1,128], index: 1, kind: input, shape index: {}]   ;;  %s287_s2 = inlined_call_operand.hbm [shape: f32[1,128], index: 2, kind: output, shape index: {}]  }
   0x1   :  { %8 = vsyncpa [#allocation6], 0 }
   0x2   :  { %9 = vsyncpa [#allocation4], 0  ;;  %s229_s9 = smov [#allocation2]   ;;  %s157_s13 = scalar_lea.hbm %s285_s0, 256 }
   0x3   :  { %s15_s10 = sshll.u32 %s229_s9, 4  ;;  %p158_p0 = scmp.ne.s32.totalorder %s285_s0, %s157_s13  ;;  %s16_s10 = int_to_ptr.vmem [resolvable:$true] %s15_s10 }
   0x4   :  { %p161_p1 = scmp.lt.u32.totalorder %s157_s13, %s285_s0 }
   0x6   :  { %p163_p2 = pnand %p161_p1, %p158_p0 }
   0x8   :  { %166 = shalt.err (!%p163_p2)
}
   0x9   :  { %s167_s18 = scalar_lea.vmem %s16_s10, 256  ;;  %p172_p4 = scmp.lt.s32.totalorder %s16_s10, %s16_s10 }
   0xa   :  { %p168_p3 = scmp.ne.s32.totalorder %s16_s10, %s167_s18  ;;  %p173_p5 = scmp.lt.s32.totalorder %s167_s18, %s167_s18 }
   0xc   :  { %p174_p6 = por %p173_p5, %p172_p4 }
   0xe   :  { %p175_p7 = pnand %p174_p6, %p168_p3 }
  0x10   :  { %178 = shalt.err (!%p175_p7)
}
  0x11   :  { %s230_s19 = smov 128   ;;  %s231_s20 = smov 8  }
  0x12   :  { %21 = dma.hbm_to_vmem [thread:$0]  %s285_s0, 256, %s16_s10, [#allocation3], %s230_s19, %s230_s19, %s231_s20  }
  0x13   :  { %s232_s23 = smov [#allocation5]   ;;  %s179_s27 = scalar_lea.hbm %s286_s1, 16 }
  0x14   :  { %s28_s24 = sshll.u32 %s232_s23, 4  ;;  %p180_p8 = scmp.ne.s32.totalorder %s286_s1, %s179_s27  ;;  %s29_s24 = int_to_ptr.vmem [resolvable:$true] %s28_s24 }
  0x15   :  { %p183_p9 = scmp.lt.u32.totalorder %s179_s27, %s286_s1 }
  0x17   :  { %p185_p10 = pnand %p183_p9, %p180_p8 }
  0x19   :  { %188 = shalt.err (!%p185_p10)
}
  0x1a   :  { %s189_s4 = scalar_lea.vmem %s29_s24, 16  ;;  %s193_s0 = scalar_lea.vmem %s29_s24, 32 }
  0x1b   :  { %p190_p11 = scmp.ne.s32.totalorder %s29_s24, %s189_s4  ;;  %p194_p12 = scmp.lt.s32.totalorder %s29_s24, %s29_s24 }
  0x1c   :  { %p195_p13 = scmp.lt.s32.totalorder %s193_s0, %s189_s4 }
  0x1e   :  { %p196_p0 = por %p195_p13, %p194_p12 }
  0x20   :  { %p197_p1 = pnand %p196_p0, %p190_p11 }
  0x22   :  { %200 = shalt.err (!%p197_p1)
}
  0x23   :  { %31 = dma.hbm_to_vmem [thread:$0]  %s286_s1, 16, %s29_s24, [#allocation6]  }
  0x24   :  { %223 = dma.done.wait [#allocation3], 256  }
  0x25   :  { %224 = vsyncadd [#allocation3], 4294967040 }
  0x26   :  { %225 = dma.done.wait [#allocation6], 16  }
  0x27   :  { %226 = vsyncadd [#allocation6], 4294967280  ;;  %v38_v0 = vld [vmem:[#allocation2] sm:$0xff]  ;;  %v39_v1 = vld [vmem:[#allocation2 + $0x8] sm:$0xff]  ;;  %v92_v44 = vlaneseq  ;;  %s233_s1 = smov [#allocation7]  }
  0x28   :  { %v40_v2 = vmax.f32 %v38_v0, %v39_v1  ;;  %v137_v52 = vld [vmem:[#allocation5] ss:$0 sm:$0xff]  ;;  %s125_s7 = sshll.u32 %s233_s1, 4  ;;  %s126_s7 = int_to_ptr.vmem [resolvable:$true] %s125_s7 }
  0x29   :  { %v93_v45 = vshrl.u32 %v92_v44, 7  ;;  %s201_s8 = scalar_lea.vmem %s126_s7, 16  ;;  %s205_s9 = scalar_lea.vmem %s126_s7, 32 }
  0x2a   :  { %v41_v3 = vrot.slane %v40_v2, 4  ;;  %p202_p2 = scmp.ne.s32.totalorder %s126_s7, %s201_s8  ;;  %p206_p3 = scmp.lt.s32.totalorder %s126_s7, %s126_s7 }
  0x2b   :  { %v94_v51 = vadd.s32 8, %v93_v45  ;;  %vm100_vm0 = vcmp.eq.s32.totalorder %v93_v45, %v137_v52  ;;  %p207_p4 = scmp.lt.s32.totalorder %s205_s9, %s201_s8 }
  0x2c   :  { %v42_v4 = vmax.f32 %v40_v2, %v41_v3 }
  0x2d   :  { %vm101_vm1 = vcmp.eq.s32.totalorder %v94_v51, %v137_v52  ;;  %p208_p5 = por %p207_p4, %p206_p3 }
  0x2e   :  { %v43_v5 = vrot.slane %v42_v4, 2 }
  0x2f   :  { %p209_p6 = pnand %p208_p5, %p202_p2 }
  0x30   :  { %v44_v6 = vmax.f32 %v42_v4, %v43_v5 }
  0x32   :  { %v45_v7 = vrot.slane %v44_v6, 1 }
  0x34   :  { %v46_v8 = vmax.f32 %v44_v6, %v45_v7 }
  0x36   :  { %v47_v9 = vsub.f32 %v38_v0, %v46_v8  ;;  %v48_v10 = vsub.f32 %v39_v1, %v46_v8  ;;  %v113_v0 = vand.u32 127, %v92_v44 }
  0x38   :  { %v49_v11 = vmul.f32 1.442695, %v47_v9  ;;  %v51_v12 = vmul.f32 1.442695, %v48_v10  ;;  %vm116_vm2 = vcmp.lt.s32.totalorder %v113_v0, 8 }
  0x3a   :  { %143 = vpow2.f32 %v49_v11 }
  0x3b   :  { %145 = vpow2.f32 %v51_v12 }
  0x44   :  { %v144_v13 = vpop.eup %143 }
  0x45   :  { %v146_v14 = vpop.eup %145 }
  0x46   :  { %v53_v15 = vadd.f32 %v146_v14, %v144_v13 }
  0x48   :  { %v54_v16 = vrot.slane %v53_v15, 4 }
  0x4a   :  { %v55_v17 = vadd.f32 %v54_v16, %v53_v15 }
  0x4c   :  { %v56_v18 = vrot.slane %v55_v17, 2 }
  0x4e   :  { %v57_v19 = vadd.f32 %v56_v18, %v55_v17 }
  0x50   :  { %v58_v20 = vrot.slane %v57_v19, 1 }
  0x52   :  { %v59_v21 = vadd.f32 %v58_v20, %v57_v19 }
  0x54   :  { %147 = vrcp.f32 %v59_v21 }
  0x5e   :  { %v148_v22 = vpop.eup %147 }
  0x5f   :  { %v61_v23 = vmul.f32 %v148_v22, %v59_v21 }
  0x61   :  { %v62_v24 = vsub.f32 2.0, %v61_v23 }
  0x63   :  { %v63_v25 = vmul.f32 %v148_v22, %v62_v24 }
  0x65   :  { %v64_v26 = vmul.f32 %v144_v13, %v63_v25  ;;  %v65_v27 = vmul.f32 %v146_v14, %v63_v25 }
  0x67   :  { %v66_v28 = vmul.f32 1.0666667, %v64_v26  ;;  %v67_v29 = vmul.f32 1.0666667, %v65_v27 }
  0x69   :  { %v68_v30 = vadd.f32 1e-07, %v66_v28  ;;  %v69_v31 = vadd.f32 1e-07, %v67_v29 }
  0x6b   :  { %149 = vrcp.f32 %v68_v30 }
  0x6c   :  { %151 = vrcp.f32 %v69_v31 }
  0x75   :  { %v150_v32 = vpop.eup %149 }
  0x76   :  { %v152_v33 = vpop.eup %151  ;;  %v72_v34 = vmul.f32 %v150_v32, %v68_v30 }
  0x77   :  { %v73_v35 = vmul.f32 %v152_v33, %v69_v31 }
  0x78   :  { %v74_v36 = vsub.f32 2.0, %v72_v34 }
  0x79   :  { %v75_v37 = vsub.f32 2.0, %v73_v35 }
  0x7a   :  { %v76_v38 = vmul.f32 %v150_v32, %v74_v36 }
  0x7b   :  { %v77_v39 = vmul.f32 %v152_v33, %v75_v37 }
  0x7c   :  { %v78_v40 = vmul.f32 %v76_v38, %v64_v26 }
  0x7d   :  { %v79_v41 = vmul.f32 %v77_v39, %v65_v27 }
  0x7e   :  { %v80_v42 = vadd.f32 1e-10, %v78_v40 }
  0x7f   :  { %v81_v43 = vadd.f32 1e-10, %v79_v41 }
  0x80   :  { %153 = vlog2.f32 %v80_v42 }
  0x81   :  { %155 = vlog2.f32 %v81_v43 }
  0x8a   :  { %v154_v46 = vpop.eup %153 }
  0x8b   :  { %v156_v47 = vpop.eup %155  ;;  %v83_v48 = vmul.f32 0.6931472, %v154_v46 }
  0x8c   :  { %v85_v49 = vmul.f32 0.6931472, %v156_v47 }
  0x8d   :  { %v86_v50 = vmul.f32 1.0666667, %v83_v48 }
  0x8e   :  { %v87_v53 = vmul.f32 1.0666667, %v85_v49 }
  0x8f   :  { %v135_v54 = vadd.f32 -0.18053669, %v86_v50 }
  0x90   :  { %v136_v55 = vadd.f32 -0.18053669, %v87_v53 }
  0x91   :  { %v90_v56 = vmul.f32 %v135_v54, %v78_v40 }
  0x92   :  { %v91_v57 = vmul.f32 %v136_v55, %v79_v41 }
  0x93   :  { %v102_v58 = vsel %vm100_vm0, 0.0, %v90_v56 }
  0x94   :  { %v103_v59 = vsel %vm101_vm1, 0.0, %v91_v57 }
  0x95   :  { %v104_v60 = vadd.f32 %v103_v59, %v102_v58 }
  0x97   :  { %v105_v61 = vrot.slane %v104_v60, 4 }
  0x99   :  { %v106_v62 = vadd.f32 %v105_v61, %v104_v60 }
  0x9b   :  { %v107_v63 = vrot.slane %v106_v62, 2 }
  0x9d   :  { %v108_v1 = vadd.f32 %v107_v63, %v106_v62 }
  0x9f   :  { %v109_v2 = vrot.slane %v108_v1, 1 }
  0xa1   :  { %v110_v3 = vadd.f32 %v109_v2, %v108_v1 }
  0xa3   :  { %v117_v4 = vsel %vm116_vm2, %v110_v3, 0.0 }
  0xa4   :  { %118 = vst [vmem:[#allocation7] sm:$0x1] %v117_v4 }
  0xa5   :  { %212 = shalt.err (!%p209_p6)
}
  0xa6   :  { %s213_s12 = scalar_lea.hbm %s287_s2, 16 }
  0xa7   :  { %p214_p7 = scmp.ne.s32.totalorder %s287_s2, %s213_s12  ;;  %p217_p8 = scmp.lt.u32.totalorder %s213_s12, %s287_s2 }
  0xa9   :  { %p219_p9 = pnand %p217_p8, %p214_p7 }
  0xab   :  { %222 = shalt.err (!%p219_p9)
}
  0xac   :  { %128 = dma.vmem_to_hbm [thread:$0]  %s126_s7, 16, %s287_s2, [#allocation4]  }
  0xad   :  { %227 = dma.done.wait [#allocation4], 16  }
  0xae   :  { %228 = vsyncadd [#allocation4], 4294967280 }
  0xaf   :  { %132 = vsyncpa [#allocation3], 1 }
  0xb0   :  { %133 = vsyncpa [#allocation6], 1 }
  0xb1   :  { %134 = vsyncpa [#allocation4], 1 }

</bundles_post_ra>
